<compile_context>
chip_gen: v7x
topology: tpu7x:2x2x1
jax: 0.10.0
libtpu: 0.0.40
codegen_flags: <defaults>
</compile_context>

<pallas_src>
import jax
import jax.numpy as jnp
from jax import lax
from jax.experimental import pallas as pl
from jax.experimental.pallas import tpu as pltpu


_SENTINEL = 1.0e6   # padded points live ~1e6 m away -> d ~ 3e12 >> any real d
_BIG = 1.0e30       # init value for the running mins


# ----------------------------------------------------------------------------
# Pallas kernel: per-(batch, seq) pair chamfer, both point axes tiled with
# online running mins.  Grid = (pair, j=target tile, i=pred tile), i innermost.
# ----------------------------------------------------------------------------
def _chamfer_pair_kernel(counts_ref, pred_ref, tgt_ref, out_ref,
                         pmin_ref, tmin_ref, acc_ref):
    pair = pl.program_id(0)
    j = pl.program_id(1)                      # target tile (middle axis)
    i = pl.program_id(2)                      # pred tile (innermost axis)
    n_j = pl.num_programs(1)
    n_i = pl.num_programs(2)

    n_valid = counts_ref[2 * pair]            # valid pred points for this pair
    m_valid = counts_ref[2 * pair + 1]        # valid target points for this pair

    p_aug = pred_ref[0]                       # (8, TN): [-2x,-2y,-2z,|p|^2,1,0,0,0]
    t_aug = tgt_ref[0]                        # (TM, 8): [x, y, z, 1, |t|^2, 0,0,0]
    tile_m = t_aug.shape[0]
    tile_n = p_aug.shape[1]

    # Homogeneous augmentation: the MXU emits squared distances directly,
    #   d_ij = ||t_i||^2 + ||p_j||^2 - 2 t_i . p_j
    # so there is no (TM, TN) elementwise VPU work in the kernel at all.
    # precision pinned so near-tie nearest neighbours don't flip (2e-3 test);
    # drop to DEFAULT (bf16x3) if the MXU becomes the binding slot.
    d = lax.dot_general(
        t_aug, p_aug,
        dimension_numbers=(((1,), (0,)), ((), ())),
        preferred_element_type=jnp.float32,
        precision=lax.Precision.HIGHEST)      # (TM, TN)

    @pl.when(jnp.logical_and(j == 0, i == 0))
    def _init_acc():
        acc_ref[...] = jnp.zeros(acc_ref.shape, jnp.float32)

    # ---- target -> pred: running row-min across pred tiles (inner axis). ----
    row_min = jnp.min(d, axis=1, keepdims=True)           # (TM, 1)

    @pl.when(i == 0)
    def _init_tmin():
        tmin_ref[...] = jnp.full(tmin_ref.shape, _BIG, jnp.float32)

    tmin_ref[...] = jnp.minimum(tmin_ref[...], row_min)

    @pl.when(i == n_i - 1)
    def _row_finalize():
        # Clamp AFTER the (monotone) min reduction; mask padded target rows.
        tmin = jnp.maximum(tmin_ref[...], 0.0)
        t_ids = j * tile_m + lax.broadcasted_iota(jnp.int32, (tile_m, 1), 0)
        t_sum = jnp.sum(jnp.where(t_ids < m_valid, tmin, 0.0),
                        axis=0, keepdims=True)             # (1, 1)
        acc_ref[...] = acc_ref[...] + t_sum                # raw sum; /m at end

    # ---- pred -> target: running col-min across target tiles (middle axis). -
    col_min = jnp.min(d, axis=0, keepdims=True)            # (1, TN)

    @pl.when(j == 0)
    def _init_pmin():
        pmin_ref[i] = jnp.full((1, tile_n), _BIG, jnp.float32)

    pmin_ref[i] = jnp.minimum(pmin_ref[i], col_min)

    @pl.when(jnp.logical_and(j == n_j - 1, i == n_i - 1))
    def _finalize():
        # Static unroll over pred chunks: runs once per pair, tiny per chunk.
        p_sum = jnp.zeros((1, 1), jnp.float32)
        for ii in range(n_i):
            chunk = jnp.maximum(pmin_ref[ii], 0.0)
            p_ids = ii * tile_n + lax.broadcasted_iota(jnp.int32, (1, tile_n), 1)
            p_sum = p_sum + jnp.sum(jnp.where(p_ids < n_valid, chunk, 0.0),
                                    axis=1, keepdims=True)
        n_f = jnp.maximum(n_valid, 1).astype(jnp.float32)   # zero-count guard
        m_f = jnp.maximum(m_valid, 1).astype(jnp.float32)
        out_ref[0] = acc_ref[...] / m_f + p_sum / n_f


def _pick_tile(size, pref):
    """Largest multiple-of-128 divisor of `size` that is <= pref."""
    best = 128
    t = 128
    limit = min(pref, size)
    while t <= limit:
        if size % t == 0:
            best = t
        t += 128
    return best


def chamfer_losses_pallas(preds, targets, counts, *, tile_m=512, tile_n=2048):
    """Per-pair symmetric squared-L2 chamfer distances.

    preds:   (P, 8, Npad) f32 augmented coords-major operand, sentinel padded.
    targets: (P, Mpad, 8) f32 augmented point-major operand, sentinel padded.
    counts:  (2*P,) int32 interleaved (n_valid, m_valid) per pair.
    returns: (P,) f32 per-pair chamfer (mean both directions, summed).
    """
    num_pairs, eight, n_pad = preds.shape
    _, m_pad, eight_t = targets.shape
    assert eight == 8 and eight_t == 8
    assert n_pad % 128 == 0 and m_pad % 128 == 0

    tm = _pick_tile(m_pad, tile_m)
    tn = _pick_tile(n_pad, tile_n)
    n_j = m_pad // tm
    n_i = n_pad // tn

    # VMEM budget: the (tm, tn) distance block (+ a temp) dominates; BlockSpec
    # tiles are double-buffered and lane-padded.  Floor above the 16/32 MiB
    # scoped defaults, cap below the v7x 64 MiB physical budget.
    vmem_bytes = (2 * 8 * tn * 4              # pred-aug block, double-buffered
                  + 2 * tm * 128 * 4          # target-aug block (lane padded)
                  + 2 * tm * tn * 4           # distance block + temp headroom
                  + n_pad * 4                 # pred->target running-min scratch
                  + tm * 128 * 4              # target->pred running-min scratch
                  + (1 << 16))
    vmem_limit = int(min(max(2 * vmem_bytes, 32 << 20), 48 << 20))

    out = pl.pallas_call(
        _chamfer_pair_kernel,
        out_shape=jax.ShapeDtypeStruct((num_pairs, 1, 1), jnp.float32),
        grid_spec=pltpu.PrefetchScalarGridSpec(
            num_scalar_prefetch=1,                       # counts -> SMEM (1-D)
            grid=(num_pairs, n_j, n_i),
            in_specs=[
                pl.BlockSpec((1, 8, tn), lambda pi, j, i, c: (pi, 0, i)),
                pl.BlockSpec((1, tm, 8), lambda pi, j, i, c: (pi, j, 0)),
            ],
            out_specs=pl.BlockSpec((1, 1, 1), lambda pi, j, i, c: (pi, 0, 0)),
            scratch_shapes=[
                pltpu.VMEM((n_i, 1, tn), jnp.float32),   # pred->tgt running min
                pltpu.VMEM((tm, 1), jnp.float32),        # tgt->pred running min
                pltpu.VMEM((1, 1), jnp.float32),         # tgt->pred sum accum
            ],
        ),
        compiler_params=pltpu.CompilerParams(
            dimension_semantics=("parallel", "arbitrary", "arbitrary"),
            vmem_limit_bytes=vmem_limit),
    )(counts, preds, targets)
    return out[:, 0, 0]


# ----------------------------------------------------------------------------
# Packing helpers: sentinel padding + fine-grained 128-aligned bucketing
# (<= 12.5% waste) + homogeneous augmentation so the MXU emits distances.
# ----------------------------------------------------------------------------
def _bucket(n):
    n = max(int(n), 1)
    granule = 128
    while granule * 8 < n:
        granule *= 2
    return ((n + granule - 1) // granule) * granule


def _pack_pred_aug(pcs):
    """list of (Ni,3) -> (P, 8, Npad) rows [-2x,-2y,-2z,||p||^2,1,0,0,0]."""
    n_pad = _bucket(max(int(pc.shape[0]) for pc in pcs))
    rows, counts = [], []
    for pc in pcs:
        n = int(pc.shape[0])
        xyz = jnp.pad(pc[:, :3].astype(jnp.float32), ((0, n_pad - n), (0, 0)),
                      constant_values=_SENTINEL)                    # (Npad, 3)
        sq = jnp.sum(xyz * xyz, axis=1, keepdims=True)              # (Npad, 1)
        aug = jnp.concatenate(
            [-2.0 * xyz, sq, jnp.ones((n_pad, 1), jnp.float32),
             jnp.zeros((n_pad, 3), jnp.float32)], axis=1)           # (Npad, 8)
        rows.append(jnp.transpose(aug))                             # (8, Npad)
        counts.append(n)
    return jnp.stack(rows, axis=0), counts


def _pack_target_aug(pcs):
    """list of (Mi,3) -> (P, Mpad, 8) cols [x, y, z, 1, ||t||^2, 0, 0, 0]."""
    m_pad = _bucket(max(int(pc.shape[0]) for pc in pcs))
    rows, counts = [], []
    for pc in pcs:
        m = int(pc.shape[0])
        xyz = jnp.pad(pc[:, :3].astype(jnp.float32), ((0, m_pad - m), (0, 0)),
                      constant_values=_SENTINEL)
        sq = jnp.sum(xyz * xyz, axis=1, keepdims=True)
        rows.append(jnp.concatenate(
            [xyz, jnp.ones((m_pad, 1), jnp.float32), sq,
             jnp.zeros((m_pad, 3), jnp.float32)], axis=1))          # (Mpad, 8)
        counts.append(m)
    return jnp.stack(rows, axis=0), counts


# ----------------------------------------------------------------------------
# Module-equivalent wrapper (plain-JAX glue around the Pallas chamfer kernel).
# ----------------------------------------------------------------------------
class UnSupervisedPredLoss:
    def __init__(self, range, voxel_size, w_chamfer, smoothness_loss_param,
                 temporal_consistency_loss_param, **kwargs):
        self.lidar_range = range
        self.voxel_size = voxel_size
        self.chamfer_norm = kwargs['chamfer_norm']
        self.chamfer_weight = w_chamfer
        self.single_predict = kwargs['single_predict']
        self.use_backward_loss = kwargs['use_backward']
        self.use_generated_mask = kwargs['weighted_loss']['use_static_mask']
        self.tile_m = kwargs.get('chamfer_tile_m', 512)
        self.tile_n = kwargs.get('chamfer_tile_n', 2048)
        # TODO(synk): SmoothnessLossSeq, TemporalConsistencyLoss,
        # InstanceConsistencyLoss and RegLoss are external submodules not
        # defined in the reference snippet; this config disables those branches.
        assert not smoothness_loss_param['flag']
        assert not temporal_consistency_loss_param['flag']
        assert not kwargs['instance_consistency_loss_param']['flag']
        assert not self.use_generated_mask
        assert not self.use_backward_loss
        # TODO(synk): norm=1 (L1) chamfer variant not implemented.
        assert self.chamfer_norm == 2

    def forward(self, data_batch, output_dict):
        batch_size = len(data_batch['past_pc'])
        pillar_flow_output = output_dict['pillar_flow_output']
        nx = int((self.lidar_range[3] - self.lidar_range[0])
                 / self.voxel_size[0])

        pred_list, tgt_list = [], []
        future_seq_len = 1
        for batch_i in range(batch_size):
            current_pc = data_batch['past_pc'][batch_i][-1][:, :3]
            n_pts = current_pc.shape[0]
            coord_x = jnp.floor(
                (current_pc[:, 0] - self.lidar_range[0]) / self.voxel_size[0])
            coord_y = jnp.floor(
                (current_pc[:, 1] - self.lidar_range[1]) / self.voxel_size[1])
            pidx = (coord_y * nx + coord_x).astype(jnp.int32)

            future_pc = data_batch['future_pc'][batch_i]
            pillar_flow_seq = pillar_flow_output[batch_i]      # (ny, nx, 2*T)
            future_seq_len = 1 if self.single_predict else len(future_pc)

            # One gather for all seq channels (instead of one take per seq).
            flow_flat = pillar_flow_seq.reshape(-1, pillar_flow_seq.shape[-1])
            selected_all = jnp.take(flow_flat, pidx, axis=0)   # (N, 2*T)

            for seq_i in range(future_seq_len):
                selected_motion = selected_all[:, seq_i * 2:seq_i * 2 + 2]
                pred_points = jnp.concatenate(
                    [current_pc[:, :2] + selected_motion,
                     jnp.zeros((n_pts, 1), jnp.float32)], axis=1)
                pred_list.append(pred_points)
                tgt_list.append(future_pc[seq_i][:, :3])

        preds, n_counts = _pack_pred_aug(pred_list)
        tgts, m_counts = _pack_target_aug(tgt_list)
        # Flat 1-D SMEM scalar-prefetch array (avoids (P,2) SMEM padding blow-up).
        counts = jnp.stack([jnp.asarray(n_counts, jnp.int32),
                            jnp.asarray(m_counts, jnp.int32)],
                           axis=1).reshape(-1)                 # (2*P,) int32

        losses = chamfer_losses_pallas(preds, tgts, counts,
                                       tile_m=self.tile_m, tile_n=self.tile_n)
        chamfer_loss = jnp.sum(losses) / future_seq_len / batch_size
        return {'chamfer_loss': self.chamfer_weight * chamfer_loss}


# ----------------------------------------------------------------------------
# Pure-JAX reference (sanity check of the Pallas kernel).
# ----------------------------------------------------------------------------
def _chamfer_ref(pred, target):
    d = jnp.sum((pred[:, None, :] - target[None, :, :]) ** 2, axis=-1)
    return jnp.min(d, axis=1).mean() + jnp.min(d, axis=0).mean()


if __name__ == "__main__":
    key = jax.random.PRNGKey(0)

    batch_size = 2
    T = 2                                  # future sequence length
    lidar_range = [-8.0, -8.0, -3.0, 8.0, 8.0, 3.0]
    voxel_size = [0.5, 0.5, 6.0]
    nx = int((lidar_range[3] - lidar_range[0]) / voxel_size[0])    # 32
    ny = int((lidar_range[4] - lidar_range[1]) / voxel_size[1])    # 32

    # Deliberately non-multiple-of-128, per-frame-varying point counts so the
    # sentinel padding, SMEM counts and the 2-D tiled online-min path are all
    # exercised (small 128x128 tiles force multiple tiles on BOTH axes).
    n_current = [200, 131]
    m_future = [[173, 150], [240, 97]]

    def rand_pc(k, n):
        xy = jax.random.uniform(k, (n, 2), jnp.float32, minval=-7.5, maxval=7.5)
        z = jax.random.uniform(jax.random.fold_in(k, 1), (n, 1), jnp.float32,
                               minval=-2.0, maxval=2.0)
        return jnp.concatenate([xy, z], axis=1)

    keys = jax.random.split(key, 32)
    k_iter = iter(keys)

    past_pc, future_pc, pillar_flow_output = [], [], []
    for b in range(batch_size):
        past_pc.append([rand_pc(next(k_iter), n_current[b]),
                        rand_pc(next(k_iter), n_current[b])])
        future_pc.append([rand_pc(next(k_iter), m_future[b][s])
                          for s in range(T)])
        flow = 0.1 * jax.random.normal(next(k_iter), (ny, nx, 2 * T),
                                       jnp.float32)
        pillar_flow_output.append(flow)

    data_batch = {'past_pc': past_pc, 'future_pc': future_pc}
    output_dict = {'pillar_flow_output': pillar_flow_output}

    loss_mod = UnSupervisedPredLoss(
        range=lidar_range,
        voxel_size=voxel_size,
        w_chamfer=1.0,
        smoothness_loss_param={'flag': False},
        temporal_consistency_loss_param={'flag': False, 'loss_norm': 2},
        chamfer_norm=2,
        weighted_loss={'use_static_mask': False},
        reg_loss_weight=1.0,
        use_backward=False,
        single_predict=False,
        chamfer_remove_static=False,
        instance_consistency_loss_param={'flag': False},
        w_smoothness=1.0,
        w_temporal_consistency=1.0,
        w_instance_consistency=1.0,
        chamfer_tile_m=128,   # small tiles so the multi-tile online-min path
        chamfer_tile_n=128,   # runs on BOTH the target and the pred axis
    )

    out = loss_mod.forward(data_batch, output_dict)
    loss = jax.block_until_ready(out['chamfer_loss'])

    # Reference: same glue, pure-JAX direct-difference chamfer.
    ref = jnp.float32(0.0)
    for b in range(batch_size):
        cur = past_pc[b][-1][:, :3]
        cx = jnp.floor((cur[:, 0] - lidar_range[0]) / voxel_size[0])
        cy = jnp.floor((cur[:, 1] - lidar_range[1]) / voxel_size[1])
        pidx = (cy * nx + cx).astype(jnp.int32)
        for s in range(T):
            mot = jnp.take(
                pillar_flow_output[b][:, :, 2 * s:2 * s + 2].reshape(-1, 2),
                pidx, axis=0)
            pred = jnp.concatenate(
                [cur[:, :2] + mot,
                 jnp.zeros((cur.shape[0], 1), jnp.float32)], axis=1)
            ref = ref + _chamfer_ref(pred, future_pc[b][s][:, :3])
    ref = ref / T / batch_size

    if not jnp.allclose(loss, ref, rtol=2e-3, atol=2e-3):
        raise AssertionError(f"mismatch: pallas={loss} ref={ref}")

    print("KERNEL_OK")
</pallas_src>

<mosaic_0001>
module attributes {stable_mosaic.version = 11 : i64} {
  func.func @_chamfer_pair_kernel(%arg0: i32, %arg1: i32, %arg2: i32, %arg3: memref<8xi32, #tpu.memory_space<smem>>, %arg4: memref<1x8x128xf32, #tpu.memory_space<vmem>>, %arg5: memref<1x128x8xf32, #tpu.memory_space<vmem>>, %arg6: memref<1x1x1xf32, #tpu.memory_space<vmem>>, %arg7: memref<2x1x128xf32, #tpu.memory_space<vmem>>, %arg8: memref<128x1xf32, #tpu.memory_space<vmem>>, %arg9: memref<1x1xf32, #tpu.memory_space<vmem>>) attributes {dimension_semantics = [#tpu.dimension_semantics<parallel>, #tpu.dimension_semantics<arbitrary>, #tpu.dimension_semantics<arbitrary>], iteration_bounds = array<i64: 4, 2, 2>, scalar_prefetch = 1 : i64, scratch_operands = 3 : i64, tpu.core_type = #tpu.core_type<tc>, window_params = [{transform_indices = @transform_0, window_bounds = array<i64: 1, 8, 128>}, {transform_indices = @transform_1, window_bounds = array<i64: 1, 128, 8>}, {transform_indices = @transform_2, window_bounds = array<i64: 1, 1, 1>}]} {
    %c2_i32 = arith.constant 2 : i32
    %0 = arith.muli %c2_i32, %arg0 : i32
    %1 = arith.index_cast %0 : i32 to index
    %2 = memref.load %arg3[%1] : memref<8xi32, #tpu.memory_space<smem>>
    %c2_i32_0 = arith.constant 2 : i32
    %3 = arith.muli %c2_i32_0, %arg0 : i32
    %c1_i32 = arith.constant 1 : i32
    %4 = arith.addi %3, %c1_i32 : i32
    %5 = arith.index_cast %4 : i32 to index
    %6 = memref.load %arg3[%5] : memref<8xi32, #tpu.memory_space<smem>>
    %c0 = arith.constant 0 : index
    %c0_1 = arith.constant 0 : index
    %c0_2 = arith.constant 0 : index
    %7 = vector.load %arg4[%c0, %c0_1, %c0_2] : memref<1x8x128xf32, #tpu.memory_space<vmem>>, vector<1x8x128xf32>
    %8 = vector.shape_cast %7 : vector<1x8x128xf32> to vector<8x128xf32>
    %c0_3 = arith.constant 0 : index
    %c0_4 = arith.constant 0 : index
    %c0_5 = arith.constant 0 : index
    %9 = vector.load %arg5[%c0_3, %c0_4, %c0_5] : memref<1x128x8xf32, #tpu.memory_space<vmem>>, vector<1x128x8xf32>
    %10 = vector.shape_cast %9 : vector<1x128x8xf32> to vector<128x8xf32>
    %cst = arith.constant dense<0.000000e+00> : vector<128x128xf32>
    %11 = tpu.matmul %10, %8, %cst {dimension_numbers = #tpu.dot_dimension_numbers<[1], [0], [0], [1], [0, 0, 1, 1], [], []>, precision = #tpu.contract_precision<fp32>} : vector<128x8xf32>, vector<8x128xf32>, vector<128x128xf32> -> vector<128x128xf32>
    %c0_i32 = arith.constant 0 : i32
    %12 = arith.cmpi eq, %arg1, %c0_i32 : i32
    %c0_i32_6 = arith.constant 0 : i32
    %13 = arith.cmpi eq, %arg2, %c0_i32_6 : i32
    %14 = arith.andi %12, %13 : i1
    %15 = arith.extui %14 : i1 to i32
    %c0_i32_7 = arith.constant 0 : i32
    %16 = arith.cmpi ne, %15, %c0_i32_7 : i32
    scf.if %16 {
      %cst_27 = arith.constant 0.000000e+00 : f32
      %46 = vector.broadcast %cst_27 : f32 to vector<1x1xf32>
      %c0_28 = arith.constant 0 : index
      %c0_29 = arith.constant 0 : index
      %47 = vector.load %arg9[%c0_28, %c0_29] : memref<1x1xf32, #tpu.memory_space<vmem>>, vector<1x1xf32>
      tpu.vector_store %arg9[%c0_28, %c0_29], %46 {strides = array<i32>} : memref<1x1xf32, #tpu.memory_space<vmem>>, vector<1x1xf32>,
    } else {
    }
    %cst_8 = arith.constant dense<0x7F800000> : vector<128xf32>
    %17 = vector.multi_reduction <minimumf>, %11, %cst_8 [1] : vector<128x128xf32> to vector<128xf32>
    %18 = vector.shape_cast %17 : vector<128xf32> to vector<128x1xf32>
    %c0_i32_9 = arith.constant 0 : i32
    %19 = arith.cmpi eq, %arg2, %c0_i32_9 : i32
    %20 = arith.extui %19 : i1 to i32
    %c0_i32_10 = arith.constant 0 : i32
    %21 = arith.cmpi ne, %20, %c0_i32_10 : i32
    scf.if %21 {
      %cst_27 = arith.constant 1.000000e+30 : f32
      %46 = vector.broadcast %cst_27 : f32 to vector<128x1xf32>
      %c0_28 = arith.constant 0 : index
      %c0_29 = arith.constant 0 : index
      %47 = vector.load %arg8[%c0_28, %c0_29] : memref<128x1xf32, #tpu.memory_space<vmem>>, vector<128x1xf32>
      tpu.vector_store %arg8[%c0_28, %c0_29], %46 {strides = array<i32>} : memref<128x1xf32, #tpu.memory_space<vmem>>, vector<128x1xf32>,
    } else {
    }
    %c0_11 = arith.constant 0 : index
    %c0_12 = arith.constant 0 : index
    %22 = vector.load %arg8[%c0_11, %c0_12] : memref<128x1xf32, #tpu.memory_space<vmem>>, vector<128x1xf32>
    %23 = arith.minimumf %22, %18 : vector<128x1xf32>
    %c0_13 = arith.constant 0 : index
    %c0_14 = arith.constant 0 : index
    %24 = vector.load %arg8[%c0_13, %c0_14] : memref<128x1xf32, #tpu.memory_space<vmem>>, vector<128x1xf32>
    tpu.vector_store %arg8[%c0_13, %c0_14], %23 {strides = array<i32>} : memref<128x1xf32, #tpu.memory_space<vmem>>, vector<128x1xf32>,
    %c1_i32_15 = arith.constant 1 : i32
    %25 = arith.cmpi eq, %arg2, %c1_i32_15 : i32
    %26 = arith.extui %25 : i1 to i32
    %c0_i32_16 = arith.constant 0 : i32
    %27 = arith.cmpi ne, %26, %c0_i32_16 : i32
    scf.if %27 {
      %c0_27 = arith.constant 0 : index
      %c0_28 = arith.constant 0 : index
      %46 = vector.load %arg8[%c0_27, %c0_28] : memref<128x1xf32, #tpu.memory_space<vmem>>, vector<128x1xf32>
      %cst_29 = arith.constant 0.000000e+00 : f32
      %47 = vector.broadcast %cst_29 : f32 to vector<128x1xf32>
      %48 = arith.maximumf %46, %47 : vector<128x1xf32>
      %c128_i32 = arith.constant 128 : i32
      %49 = arith.muli %arg1, %c128_i32 : i32
      %50 = tpu.iota {dimensions = array<i32: 0>} : vector<128x1xi32>
      %51 = vector.broadcast %49 : i32 to vector<128x1xi32>
      %52 = arith.addi %51, %50 : vector<128x1xi32>
      %53 = vector.broadcast %6 : i32 to vector<128x1xi32>
      %54 = arith.cmpi slt, %52, %53 : vector<128x1xi32>
      %cst_30 = arith.constant 0.000000e+00 : f32
      %55 = vector.broadcast %cst_30 : f32 to vector<128x1xf32>
      %56 = arith.select %54, %48, %55 : vector<128x1xi1>, vector<128x1xf32>
      %cst_31 = arith.constant dense<0.000000e+00> : vector<1xf32>
      %57 = vector.multi_reduction <add>, %56, %cst_31 [0] : vector<128x1xf32> to vector<1xf32>
      %58 = vector.shape_cast %57 : vector<1xf32> to vector<1x1xf32>
      %c0_32 = arith.constant 0 : index
      %c0_33 = arith.constant 0 : index
      %59 = vector.load %arg9[%c0_32, %c0_33] : memref<1x1xf32, #tpu.memory_space<vmem>>, vector<1x1xf32>
      %60 = arith.addf %59, %58 : vector<1x1xf32>
      %c0_34 = arith.constant 0 : index
      %c0_35 = arith.constant 0 : index
      %61 = vector.load %arg9[%c0_34, %c0_35] : memref<1x1xf32, #tpu.memory_space<vmem>>, vector<1x1xf32>
      tpu.vector_store %arg9[%c0_34, %c0_35], %60 {strides = array<i32>} : memref<1x1xf32, #tpu.memory_space<vmem>>, vector<1x1xf32>,
    } else {
    }
    %cst_17 = arith.constant dense<0x7F800000> : vector<128xf32>
    %28 = vector.multi_reduction <minimumf>, %11, %cst_17 [0] : vector<128x128xf32> to vector<128xf32>
    %29 = vector.shape_cast %28 : vector<128xf32> to vector<1x128xf32>
    %c0_i32_18 = arith.constant 0 : i32
    %30 = arith.cmpi eq, %arg1, %c0_i32_18 : i32
    %31 = arith.extui %30 : i1 to i32
    %c0_i32_19 = arith.constant 0 : i32
    %32 = arith.cmpi ne, %31, %c0_i32_19 : i32
    scf.if %32 {
      %cst_27 = arith.constant 1.000000e+30 : f32
      %46 = vector.broadcast %cst_27 : f32 to vector<1x128xf32>
      %47 = arith.index_cast %arg2 : i32 to index
      %c0_28 = arith.constant 0 : index
      %c0_29 = arith.constant 0 : index
      %48 = vector.load %arg7[%47, %c0_28, %c0_29] : memref<2x1x128xf32, #tpu.memory_space<vmem>>, vector<1x1x128xf32>
      %49 = vector.shape_cast %48 : vector<1x1x128xf32> to vector<1x128xf32>
      %50 = vector.shape_cast %46 : vector<1x128xf32> to vector<1x1x128xf32>
      tpu.vector_store %arg7[%47, %c0_28, %c0_29], %50 {strides = array<i32>} : memref<2x1x128xf32, #tpu.memory_space<vmem>>, vector<1x1x128xf32>,
    } else {
    }
    %33 = arith.index_cast %arg2 : i32 to index
    %c0_20 = arith.constant 0 : index
    %c0_21 = arith.constant 0 : index
    %34 = vector.load %arg7[%33, %c0_20, %c0_21] : memref<2x1x128xf32, #tpu.memory_space<vmem>>, vector<1x1x128xf32>
    %35 = vector.shape_cast %34 : vector<1x1x128xf32> to vector<1x128xf32>
    %36 = arith.minimumf %35, %29 : vector<1x128xf32>
    %37 = arith.index_cast %arg2 : i32 to index
    %c0_22 = arith.constant 0 : index
    %c0_23 = arith.constant 0 : index
    %38 = vector.load %arg7[%37, %c0_22, %c0_23] : memref<2x1x128xf32, #tpu.memory_space<vmem>>, vector<1x1x128xf32>
    %39 = vector.shape_cast %38 : vector<1x1x128xf32> to vector<1x128xf32>
    %40 = vector.shape_cast %36 : vector<1x128xf32> to vector<1x1x128xf32>
    tpu.vector_store %arg7[%37, %c0_22, %c0_23], %40 {strides = array<i32>} : memref<2x1x128xf32, #tpu.memory_space<vmem>>, vector<1x1x128xf32>,
    %c1_i32_24 = arith.constant 1 : i32
    %41 = arith.cmpi eq, %arg1, %c1_i32_24 : i32
    %c1_i32_25 = arith.constant 1 : i32
    %42 = arith.cmpi eq, %arg2, %c1_i32_25 : i32
    %43 = arith.andi %41, %42 : i1
    %44 = arith.extui %43 : i1 to i32
    %c0_i32_26 = arith.constant 0 : i32
    %45 = arith.cmpi ne, %44, %c0_i32_26 : i32
    scf.if %45 {
      %cst_27 = arith.constant 0.000000e+00 : f32
      %46 = vector.broadcast %cst_27 : f32 to vector<1x1xf32>
      %c0_28 = arith.constant 0 : index
      %c0_29 = arith.constant 0 : index
      %c0_30 = arith.constant 0 : index
      %47 = vector.load %arg7[%c0_28, %c0_29, %c0_30] : memref<2x1x128xf32, #tpu.memory_space<vmem>>, vector<1x1x128xf32>
      %48 = vector.shape_cast %47 : vector<1x1x128xf32> to vector<1x128xf32>
      %cst_31 = arith.constant 0.000000e+00 : f32
      %49 = vector.broadcast %cst_31 : f32 to vector<1x128xf32>
      %50 = arith.maximumf %48, %49 : vector<1x128xf32>
      %51 = tpu.iota {dimensions = array<i32: 1>} : vector<1x128xi32>
      %c0_i32_32 = arith.constant 0 : i32
      %52 = vector.broadcast %c0_i32_32 : i32 to vector<1x128xi32>
      %53 = arith.addi %52, %51 : vector<1x128xi32>
      %54 = vector.broadcast %2 : i32 to vector<1x128xi32>
      %55 = arith.cmpi slt, %53, %54 : vector<1x128xi32>
      %cst_33 = arith.constant 0.000000e+00 : f32
      %56 = vector.broadcast %cst_33 : f32 to vector<1x128xf32>
      %57 = arith.select %55, %50, %56 : vector<1x128xi1>, vector<1x128xf32>
      %cst_34 = arith.constant dense<0.000000e+00> : vector<1xf32>
      %58 = vector.multi_reduction <add>, %57, %cst_34 [1] : vector<1x128xf32> to vector<1xf32>
      %59 = vector.shape_cast %58 : vector<1xf32> to vector<1x1xf32>
      %60 = arith.addf %46, %59 : vector<1x1xf32>
      %c1 = arith.constant 1 : index
      %c0_35 = arith.constant 0 : index
      %c0_36 = arith.constant 0 : index
      %61 = vector.load %arg7[%c1, %c0_35, %c0_36] : memref<2x1x128xf32, #tpu.memory_space<vmem>>, vector<1x1x128xf32>
      %62 = vector.shape_cast %61 : vector<1x1x128xf32> to vector<1x128xf32>
      %cst_37 = arith.constant 0.000000e+00 : f32
      %63 = vector.broadcast %cst_37 : f32 to vector<1x128xf32>
      %64 = arith.maximumf %62, %63 : vector<1x128xf32>
      %65 = tpu.iota {dimensions = array<i32: 1>} : vector<1x128xi32>
      %c128_i32 = arith.constant 128 : i32
      %66 = vector.broadcast %c128_i32 : i32 to vector<1x128xi32>
      %67 = arith.addi %66, %65 : vector<1x128xi32>
      %68 = vector.broadcast %2 : i32 to vector<1x128xi32>
      %69 = arith.cmpi slt, %67, %68 : vector<1x128xi32>
      %cst_38 = arith.constant 0.000000e+00 : f32
      %70 = vector.broadcast %cst_38 : f32 to vector<1x128xf32>
      %71 = arith.select %69, %64, %70 : vector<1x128xi1>, vector<1x128xf32>
      %cst_39 = arith.constant dense<0.000000e+00> : vector<1xf32>
      %72 = vector.multi_reduction <add>, %71, %cst_39 [1] : vector<1x128xf32> to vector<1xf32>
      %73 = vector.shape_cast %72 : vector<1xf32> to vector<1x1xf32>
      %74 = arith.addf %60, %73 : vector<1x1xf32>
      %c1_i32_40 = arith.constant 1 : i32
      %75 = arith.maxsi %2, %c1_i32_40 : i32
      %76 = arith.sitofp %75 : i32 to f32
      %c1_i32_41 = arith.constant 1 : i32
      %77 = arith.maxsi %6, %c1_i32_41 : i32
      %78 = arith.sitofp %77 : i32 to f32
      %c0_42 = arith.constant 0 : index
      %c0_43 = arith.constant 0 : index
      %79 = vector.load %arg9[%c0_42, %c0_43] : memref<1x1xf32, #tpu.memory_space<vmem>>, vector<1x1xf32>
      %80 = vector.broadcast %78 : f32 to vector<1x1xf32>
      %81 = arith.divf %79, %80 : vector<1x1xf32>
      %82 = vector.broadcast %76 : f32 to vector<1x1xf32>
      %83 = arith.divf %74, %82 : vector<1x1xf32>
      %84 = arith.addf %81, %83 : vector<1x1xf32>
      %c0_44 = arith.constant 0 : index
      %c0_45 = arith.constant 0 : index
      %c0_46 = arith.constant 0 : index
      %85 = vector.load %arg6[%c0_44, %c0_45, %c0_46] : memref<1x1x1xf32, #tpu.memory_space<vmem>>, vector<1x1x1xf32>
      %86 = vector.shape_cast %85 : vector<1x1x1xf32> to vector<1x1xf32>
      %87 = vector.shape_cast %84 : vector<1x1xf32> to vector<1x1x1xf32>
      tpu.vector_store %arg6[%c0_44, %c0_45, %c0_46], %87 {strides = array<i32>} : memref<1x1x1xf32, #tpu.memory_space<vmem>>, vector<1x1x1xf32>,
    } else {
    }
    return
  }
  func.func @transform_0(%arg0: i32, %arg1: i32, %arg2: i32, %arg3: memref<8xi32, #tpu.memory_space<smem>>) -> (i32, i32, i32) {
    %c0_i32 = arith.constant 0 : i32
    %c0_i32_0 = arith.constant 0 : i32
    return %arg0, %c0_i32, %arg2 : i32, i32, i32
  }
  func.func @transform_1(%arg0: i32, %arg1: i32, %arg2: i32, %arg3: memref<8xi32, #tpu.memory_space<smem>>) -> (i32, i32, i32) {
    %c0_i32 = arith.constant 0 : i32
    %c0_i32_0 = arith.constant 0 : i32
    return %arg0, %arg1, %c0_i32 : i32, i32, i32
  }
  func.func @transform_2(%arg0: i32, %arg1: i32, %arg2: i32, %arg3: memref<8xi32, #tpu.memory_space<smem>>) -> (i32, i32, i32) {
    %c0_i32 = arith.constant 0 : i32
    %c0_i32_0 = arith.constant 0 : i32
    %c0_i32_1 = arith.constant 0 : i32
    return %arg0, %c0_i32, %c0_i32_0 : i32, i32, i32
  }
}

</mosaic_0001>

<bundles_post_ra>
// kernel: tpu_custom_call.1
= control target key start
LH: loop header
LB: loop body
LE: loop exit
PB: predicated region body
PF: predicated region fallthrough
CT: control target
= control target key end

     0   :  { %s2850_s0 = inlined_call_operand.vmem [shape: s32[8], index: 0, kind: input, shape index: {}]   ;;  %s2851_s1 = inlined_call_operand.vmem [shape: f32[4,8,256], index: 1, kind: input, shape index: {}]   ;;  %s2852_s2 = inlined_call_operand.vmem [shape: f32[4,256,8], index: 2, kind: input, shape index: {}]   ;;  %s2853_s3 = inlined_call_operand.vmem [shape: f32[4,1,1], index: 3, kind: output, shape index: {}]  }
   0x1   :  { %s8_s14 = sshll.u32 %s2850_s0, 4  ;;  %s9_s14 = int_to_ptr.vmem [resolvable:$true] %s8_s14 }
   0x2   :  { %s2210_s15 = scalar_lea.vmem %s9_s14, 16  ;;  %p2215_p1 = scmp.lt.s32.totalorder %s9_s14, %s9_s14 }
   0x3   :  { %p2211_p0 = scmp.ne.s32.totalorder %s9_s14, %s2210_s15  ;;  %p2216_p2 = scmp.lt.s32.totalorder %s2210_s15, %s2210_s15 }
   0x5   :  { %p2217_p3 = por %p2216_p2, %p2215_p1 }
   0x7   :  { %p2218_p4 = pnand %p2217_p3, %p2211_p0 }
   0x9   :  { %2221 = shalt.err (!%p2218_p4)  }
   0xa   :  { %s2280_s16 = smov [#allocation6]  }
   0xb   :  { %11 = dma.vmem_to_smem %s9_s14, 16, %s2280_s16, [#allocation5] }
   0xc   :  { %2250 = dma.done.wait [#allocation5], 16 }
   0xd   :  { %2251 = vsyncadd [#allocation5], 4294967280 }
   0xe   :  { %13 = sfence }
   0xf   :  { %s2307_s17 = smov 0   ;;  %s2309_s18 = smov 0  }
  0x10   :  { %s2311_s19 = smov 0   ;;  %s2313_s0 = smov 0  }
  0x11   :  { %s2315_s20 = smov 0   ;;  %s2317_s21 = smov 0  }
  0x12   :  { %s2319_s22 = smov 0  }
  0x13 LB: > { %s31_s23 = sadd.s32 1, %s2266_s0  ;;  %s34_s24 = sadd.s32 1, %s2270_s20  ;;  %s2278_s22 = sphi %s2319_s22, %s19_s22   ;;  %s2274_s21 = sphi %s2317_s21, %s2860_s21   ;;  %s2270_s20 = sphi %s2315_s20, %s2859_s20   ;;  %s2266_s0 = sphi %s2313_s0, %s2858_s0   ;;  %s2262_s19 = sphi %s2311_s19, %s2857_s19   ;;  %s2258_s18 = sphi %s2309_s18, %s2856_s18   ;;  %s2254_s17 = sphi %s2307_s17, %s2855_s17  }
  0x14   : > { %p32_p5 = scmp.ge.s32.totalorder %s31_s23, 2  ;;  %p1795_p6 = scmp.ge.s32.totalorder %s2278_s22, 1 }
  0x15   : > { %p160_p7 = scmp.lt.s32.totalorder %s2278_s22, 17  ;;  %s38_s25 = sadd.s32 1, %s2274_s21 }
  0x16   : > { %s2862_s23 = smov (%p32_p5, %s31_s23), 0  ;;  %s2864_s24 = smov (!%p32_p5, %s34_s24), %s2270_s20 }
  0x17   : > { %p161_p8 = pnand %p1795_p6, %p160_p7  ;;  %p36_p9 = scmp.ge.s32.totalorder %s2864_s24, 2 }
  0x18   : > { %p192_p11 = scmp.lt.s32.totalorder (!%p161_p8), %s2262_s19, 3  ;;  %p194_p12 = scmp.lt.s32.totalorder (!%p161_p8), %s2254_s17, 1  ;;  %vm234_vm0 = vcmask (!%p161_p8), 64512  }
  0x19   : > { %s2866_s24 = smov (%p36_p9, %s2864_s24), 0  ;;  %s2868_s25 = smov (!%p36_p9, %s38_s25), %s2274_s21 }
  0x1a   : > { %p40_p10 = scmp.ge.s32.totalorder %s2868_s25, 4  ;;  %164 = sbr.rel (%p161_p8) target bundleno = 780 (0x30c), region = 28 }
  0x1b   : > { %s1798_s26 = sshll.u32 (!%p161_p8), %s2258_s18, 4  ;;  %s1801_s27 = sshll.u32 (!%p161_p8), %s2262_s19, 1 }
  0x1c   : > { %s2870_s25 = smov (%p40_p10, %s2868_s25), 0  ;;  %p203_p13 = scmp.lt.s32.totalorder (!%p161_p8), %s1798_s26, 31 }
  0x1d   : > { %s2372_s12 = sld [smem:[#allocation6 + %s1801_s27]] (!%p161_p8)  ;;  %s215_s13 = sadd.s32 (!%p161_p8), 1, %s1801_s27 }
  0x1e   : > { %s2376_s15 = sld [smem:[#allocation6 + %s215_s13]] (!%p161_p8)  ;;  %p1374_p0 = scmp.eq.s32.totalorder (!%p161_p8), %s2258_s18, 0 }
  0x1f   : > { %p1375_p1 = scmp.eq.s32.totalorder (!%p161_p8), %s2254_s17, 0 }
  0x21   : > { %s2872_s19 = smov (!%p192_p11, %s2262_s19), 3  ;;  %s2874_s26 = smov (!%p203_p13, %s1798_s26), 31 }
  0x22   : > { %s195_s28 = scalar_select %p194_p12, %s2254_s17, 1 }
  0x23   : > { %s1796_s29 = sshll.u32 %s2872_s19, 1  ;;  %s1799_s4 = sshll.u32 %s2872_s19, 5 }
  0x24   : > { %s197_s30 = sadd.s32 %s1796_s29, %s195_s28  ;;  %s212_s8 = scalar_lea.vmem %s2853_s3, %s2872_s19 }
  0x25   : > { %s1797_s5 = sshll.u32 %s197_s30, 3  ;;  %s206_s14 = sadd.s32 %s1799_s4, %s2874_s26 }
  0x26   : > { %s199_s11 = scalar_lea.vmem %s2851_s1, %s1797_s5  ;;  %s1800_s16 = sshll.u32 %s206_s14, 3 }
  0x27   : > { %v217_v0 = vld [vmem:[%s199_s11] sm:$0xff]  ;;  %s2386_s30 = scalar_lea.vmem %s2852_s2, %s1800_s16  ;;  %p2606_p2 = pnand %p1375_p1, %p1374_p0 }
  0x28   : > { %v2374_v1 = vand.u32 4294901760, %v217_v0  ;;  %v218_v3 = vld [vmem:[%s2386_s30] sm:$0xff]  ;;  %v219_v4 = vld [vmem:[%s2386_s30 + $0x8] sm:$0xff]  ;;  %v220_v6 = vld [vmem:[%s2386_s30 + $0x10] sm:$0xff]  ;;  %vm1380_vm1 = vcmask (!%p2606_p2), 0  }
  0x29   : > { %v236_v7 = vsel %vm234_vm0, %v218_v3, 0  ;;  %v239_v8 = vsel %vm234_vm0, %v219_v4, 0  ;;  %v242_v9 = vsel %vm234_vm0, %v220_v6, 0  ;;  %v221_v10 = vld [vmem:[%s2386_s30 + $0x18] sm:$0xff]  ;;  %v222_v11 = vld [vmem:[%s2386_s30 + $0x20] sm:$0xff]  ;;  %v223_v12 = vld [vmem:[%s2386_s30 + $0x28] sm:$0xff] }
  0x2a   : > { %1988 = vmatprep.subr.mxu0 %v2374_v1  ;;  %1910 = vmatprep.subr.mxu1 %v2374_v1  ;;  %v2381_v2 = vsub.f32 %v217_v0, %v2374_v1  ;;  %v2400_v13 = vand.u32 4294901760, %v236_v7  ;;  %v2402_v14 = vand.u32 4294901760, %v239_v8  ;;  %v2405_v16 = vand.u32 4294901760, %v242_v9  ;;  %v224_v17 = vld [vmem:[%s2386_s30 + $0x30] sm:$0xff]  ;;  %v225_v22 = vld [vmem:[%s2386_s30 + $0x38] sm:$0xff]  ;;  %v226_v43 = vld [vmem:[%s2386_s30 + $0x40] sm:$0xff] }
  0x2b   : > { %1989 = vmatpush3.msra.mxu0 %v2374_v1  ;;  %1911 = vmatpush3.msra.mxu1 %v2374_v1  ;;  %v245_v18 = vsel %vm234_vm0, %v221_v10, 0  ;;  %v248_v19 = vsel %vm234_vm0, %v222_v11, 0  ;;  %v251_v20 = vsel %vm234_vm0, %v223_v12, 0  ;;  %v254_v21 = vsel %vm234_vm0, %v224_v17, 0  ;;  %v227_v48 = vld [vmem:[%s2386_s30 + $0x48] sm:$0xff]  ;;  %v228_v49 = vld [vmem:[%s2386_s30 + $0x50] sm:$0xff] }
  0x2c   : > { %v512_v5 = vand.u32 4294901760, %v2381_v2  ;;  %v2414_v23 = vsub.f32 %v236_v7, %v2400_v13  ;;  %v2417_v24 = vsub.f32 %v239_v8, %v2402_v14  ;;  %v2420_v26 = vsub.f32 %v242_v9, %v2405_v16  ;;  %v229_v58 = vld [vmem:[%s2386_s30 + $0x58] sm:$0xff]  ;;  %v230_v59 = vld [vmem:[%s2386_s30 + $0x60] sm:$0xff]  ;;  %v231_v0 = vld [vmem:[%s2386_s30 + $0x68] sm:$0xff] }
  0x2d   : > { %v2422_v27 = vand.u32 4294901760, %v245_v18  ;;  %v2424_v28 = vand.u32 4294901760, %v248_v19  ;;  %v2426_v29 = vand.u32 4294901760, %v251_v20  ;;  %v2428_v30 = vand.u32 4294901760, %v254_v21  ;;  %v232_v3 = vld [vmem:[%s2386_s30 + $0x70] sm:$0xff] }
  0x2e   : > { %v513_v15 = vsub.f32 %v2381_v2, %v512_v5  ;;  %2014 = vmatprep.subr.mxu0 %v512_v5  ;;  %v351_v31 = vand.u32 4294901760, %v2414_v23  ;;  %v361_v32 = vand.u32 4294901760, %v2417_v24  ;;  %v371_v33 = vand.u32 4294901760, %v2420_v26 }
  0x2f   : > { %v257_v34 = vsel %vm234_vm0, %v225_v22, 0  ;;  %v2435_v35 = vsub.f32 %v245_v18, %v2422_v27  ;;  %v2438_v36 = vsub.f32 %v248_v19, %v2424_v28  ;;  %v2441_v37 = vsub.f32 %v251_v20, %v2426_v29  ;;  %v233_v18 = vld [vmem:[%s2386_s30 + $0x78] sm:$0xff] }
  0x30   : > { %v514_v25 = vand.u32 4294901760, %v513_v15  ;;  %v2444_v38 = vsub.f32 %v254_v21, %v2428_v30  ;;  %1990 = vmatprep.mubr.f32.mxu0 %v351_v31  ;;  %v352_v39 = vsub.f32 %v2414_v23, %v351_v31  ;;  %v362_v40 = vsub.f32 %v2417_v24, %v361_v32 }
  0x31   : > { %v372_v41 = vsub.f32 %v2420_v26, %v371_v33  ;;  %v2449_v42 = vand.u32 4294901760, %v257_v34  ;;  %1991 = vmatmul.mubr.f32.vlgmr.msra.gmra.mrb[0].mxu0 %v361_v32  ;;  %v381_v44 = vand.u32 4294901760, %v2435_v35  ;;  %v391_v45 = vand.u32 4294901760, %v2438_v36 }
  0x32   : > { %1936 = vmatprep.subr.mxu1 %v514_v25  ;;  %v401_v46 = vand.u32 4294901760, %v2441_v37  ;;  %v411_v47 = vand.u32 4294901760, %v2444_v38  ;;  %v353_v50 = vand.u32 4294901760, %v352_v39  ;;  %1993 = vmatprep.mubr.f32.mxu0 %v371_v33  ;;  %v363_v51 = vand.u32 4294901760, %v362_v40 }
  0x33   : > { %2015 = vmatpush3.msra.mxu0 %v512_v5  ;;  %v373_v52 = vand.u32 4294901760, %v372_v41  ;;  %v2459_v53 = vsub.f32 %v257_v34, %v2449_v42  ;;  %v382_v54 = vsub.f32 %v2435_v35, %v381_v44  ;;  %v392_v55 = vsub.f32 %v2438_v36, %v391_v45 }
  0x34   : > { %v402_v56 = vsub.f32 %v2441_v37, %v401_v46  ;;  %v412_v57 = vsub.f32 %v2444_v38, %v411_v47  ;;  %2040 = vmatprep.subr.mxu0 %v2374_v1  ;;  %1912 = vmatprep.mubr.f32.mxu1 %v353_v50  ;;  %v260_v61 = vsel %vm234_vm0, %v226_v43, 0  ;;  %v263_v62 = vsel %vm234_vm0, %v227_v48, 0 }
  0x35   : > { %v421_v60 = vand.u32 4294901760, %v2459_v53  ;;  %v266_v63 = vsel %vm234_vm0, %v228_v49, 0  ;;  %1913 = vmatmul.mubr.f32.vlgmr.msra.gmra.mrb[0].mxu1 %v363_v51  ;;  %1994 = vmatmul.mubr.f32.gmra.mrb[2].mxu0 %v381_v44  ;;  %v383_v4 = vand.u32 4294901760, %v382_v54  ;;  %v393_v5 = vand.u32 4294901760, %v392_v55 }
  0x36   : > { %v403_v6 = vand.u32 4294901760, %v402_v56  ;;  %1937 = vmatpush3.msra.mxu1 %v514_v25  ;;  %1915 = vmatprep.mubr.f32.mxu1 %v373_v52  ;;  %v413_v7 = vand.u32 4294901760, %v412_v57  ;;  %v2474_v8 = vand.u32 4294901760, %v260_v61  ;;  %v2476_v9 = vand.u32 4294901760, %v263_v62 }
  0x37   : > { %v2478_v10 = vand.u32 4294901760, %v266_v63  ;;  %1996 = vmatprep.mubr.f32.mxu0 %v391_v45  ;;  %v269_v11 = vsel %vm234_vm0, %v229_v58, 0  ;;  %v272_v12 = vsel %vm234_vm0, %v230_v59, 0  ;;  %v275_v15 = vsel %vm234_vm0, %v231_v0, 0  ;;  %1962 = vmatprep.subr.mxu1 %v2381_v2 }
  0x38   : > { %v278_v17 = vsel %vm234_vm0, %v232_v3, 0  ;;  %v2487_v19 = vsub.f32 %v260_v61, %v2474_v8  ;;  %v422_v20 = vsub.f32 %v2459_v53, %v421_v60  ;;  %v2491_v21 = vsub.f32 %v263_v62, %v2476_v9 }
  0x39   : > { %v2494_v22 = vsub.f32 %v266_v63, %v2478_v10  ;;  %1916 = vmatmul.mubr.f32.gmra.mrb[2].mxu1 %v383_v4  ;;  %1997 = vmatmul.mubr.f32.gmra.mrb[4].mxu0 %v401_v46  ;;  %v2496_v25 = vand.u32 4294901760, %v269_v11  ;;  %v2498_v31 = vand.u32 4294901760, %v272_v12  ;;  %v2500_v32 = vand.u32 4294901760, %v275_v15 }
  0x3a   : > { %v2502_v33 = vand.u32 4294901760, %v278_v17  ;;  %1918 = vmatprep.mubr.f32.mxu1 %v393_v5  ;;  %1999 = vmatprep.mubr.f32.mxu0 %v411_v47  ;;  %v431_v34 = vand.u32 4294901760, %v2487_v19  ;;  %v441_v39 = vand.u32 4294901760, %v2491_v21  ;;  %v281_v41 = vsel %vm234_vm0, %v233_v18, 0 }
  0x3b   : > { %v451_v40 = vand.u32 4294901760, %v2494_v22  ;;  %v2509_v43 = vsub.f32 %v269_v11, %v2496_v25  ;;  %v2512_v44 = vsub.f32 %v272_v12, %v2498_v31  ;;  %v423_v45 = vand.u32 4294901760, %v422_v20 }
  0x3c   : > { %v432_v46 = vsub.f32 %v2487_v19, %v431_v34  ;;  %v442_v47 = vsub.f32 %v2491_v21, %v441_v39  ;;  %v2518_v49 = vsub.f32 %v275_v15, %v2500_v32  ;;  %v2520_v50 = vand.u32 4294901760, %v281_v41 }
  0x3d   : > { %1919 = vmatmul.mubr.f32.gmra.mrb[4].mxu1 %v403_v6  ;;  %2000 = vmatmul.mubr.f32.gmra.mrb[6].mxu0 %v421_v60  ;;  %v461_v48 = vand.u32 4294901760, %v2509_v43  ;;  %v452_v52 = vsub.f32 %v2494_v22, %v451_v40  ;;  %v471_v54 = vand.u32 4294901760, %v2512_v44  ;;  %v2525_v55 = vsub.f32 %v278_v17, %v2502_v33 }
  0x3e   : > { %1921 = vmatprep.mubr.f32.mxu1 %v413_v7  ;;  %2002 = vmatprep.mubr.f32.mxu0 %v431_v34  ;;  %v433_v51 = vand.u32 4294901760, %v432_v46  ;;  %v443_v56 = vand.u32 4294901760, %v442_v47  ;;  %v481_v58 = vand.u32 4294901760, %v2518_v49  ;;  %v2530_v59 = vsub.f32 %v281_v41, %v2520_v50 }
  0x3f   : > { %v462_v57 = vsub.f32 %v2509_v43, %v461_v48  ;;  %v453_v60 = vand.u32 4294901760, %v452_v52  ;;  %v472_v61 = vsub.f32 %v2512_v44, %v471_v54  ;;  %v491_v62 = vand.u32 4294901760, %v2525_v55 }
  0x40   : > { %v482_v0 = vsub.f32 %v2518_v49, %v481_v58  ;;  %v501_v3 = vand.u32 4294901760, %v2530_v59 }
  0x41   : > { %1922 = vmatmul.mubr.f32.gmra.mrb[6].mxu1 %v423_v45  ;;  %2003 = vmatmul.mubr.f32.gmra.mrb[8].mxu0 %v441_v39  ;;  %v463_v63 = vand.u32 4294901760, %v462_v57  ;;  %v473_v4 = vand.u32 4294901760, %v472_v61  ;;  %v492_v5 = vsub.f32 %v2525_v55, %v491_v62 }
  0x42   : > { %1924 = vmatprep.mubr.f32.mxu1 %v433_v51  ;;  %2005 = vmatprep.mubr.f32.mxu0 %v451_v40  ;;  %v483_v6 = vand.u32 4294901760, %v482_v0  ;;  %v502_v7 = vsub.f32 %v2530_v59, %v501_v3 }
  0x43   : > { %v493_v11 = vand.u32 4294901760, %v492_v5 }
  0x44   : > { %v503_v12 = vand.u32 4294901760, %v502_v7 }
  0x45   : > { %1925 = vmatmul.mubr.f32.gmra.mrb[8].mxu1 %v443_v56  ;;  %2006 = vmatmul.mubr.f32.gmra.mrb[10].mxu0 %v461_v48  ;;  %v2281_v56 = vmov (!%p2606_p2), 0.0  }
  0x46   : > { %1927 = vmatprep.mubr.f32.mxu1 %v453_v60  ;;  %2008 = vmatprep.mubr.f32.mxu0 %v471_v54  ;;  %1381 = vst.msk [vmem:[#allocation4] sm:$0x1] (!%p2606_p2), %vm1380_vm1, %v2281_v56 }
  0x49   : > { %1928 = vmatmul.mubr.f32.gmra.mrb[10].mxu1 %v463_v63  ;;  %2009 = vmatmul.mubr.f32.gmra.mrb[12].mxu0 %v481_v58 }
  0x4a   : > { %1930 = vmatprep.mubr.f32.mxu1 %v473_v4  ;;  %2011 = vmatprep.mubr.f32.mxu0 %v491_v62 }
  0x4d   : > { %1931 = vmatmul.mubr.f32.gmra.mrb[12].mxu1 %v483_v6  ;;  %2012 = vmatmul.mubr.f32.gmra.mrb[14].mxu0 %v501_v3 }
  0x4e   : > { %1933 = vmatprep.mubr.f32.mxu1 %v493_v11  ;;  %2016 = vmatprep.mubr.f32.mxu0 %v2400_v13 }
  0x51   : > { %1934 = vmatmul.mubr.f32.gmra.mrb[14].mxu1 %v503_v12  ;;  %2017 = vmatmul.mubr.f32.vlgmr.msra.gmra.mrb[0].mxu0 %v2402_v14 }
  0x52   : > { %1938 = vmatprep.mubr.f32.mxu1 %v2400_v13  ;;  %2019 = vmatprep.mubr.f32.mxu0 %v2405_v16 }
  0x53   : > { %2041 = vmatpush3.msra.mxu0 %v2374_v1 }
  0x55   : > { %1939 = vmatmul.mubr.f32.vlgmr.msra.gmra.mrb[0].mxu1 %v2402_v14  ;;  %2020 = vmatmul.mubr.f32.gmra.mrb[2].mxu0 %v2422_v27 }
  0x56   : > { %1963 = vmatpush3.msra.mxu1 %v2381_v2  ;;  %1941 = vmatprep.mubr.f32.mxu1 %v2405_v16 }
  0x57   : > { %2022 = vmatprep.mubr.f32.mxu0 %v2424_v28 }
  0x59   : > { %1942 = vmatmul.mubr.f32.gmra.mrb[2].mxu1 %v2422_v27  ;;  %2023 = vmatmul.mubr.f32.gmra.mrb[4].mxu0 %v2426_v29 }
  0x5a   : > { %1944 = vmatprep.mubr.f32.mxu1 %v2424_v28  ;;  %2025 = vmatprep.mubr.f32.mxu0 %v2428_v30 }
  0x5d   : > { %1945 = vmatmul.mubr.f32.gmra.mrb[4].mxu1 %v2426_v29  ;;  %2026 = vmatmul.mubr.f32.gmra.mrb[6].mxu0 %v2449_v42 }
  0x5e   : > { %1947 = vmatprep.mubr.f32.mxu1 %v2428_v30  ;;  %2028 = vmatprep.mubr.f32.mxu0 %v2474_v8 }
  0x61   : > { %1948 = vmatmul.mubr.f32.gmra.mrb[6].mxu1 %v2449_v42  ;;  %2029 = vmatmul.mubr.f32.gmra.mrb[8].mxu0 %v2476_v9 }
  0x62   : > { %1950 = vmatprep.mubr.f32.mxu1 %v2474_v8  ;;  %2031 = vmatprep.mubr.f32.mxu0 %v2478_v10 }
  0x65   : > { %1951 = vmatmul.mubr.f32.gmra.mrb[8].mxu1 %v2476_v9  ;;  %2032 = vmatmul.mubr.f32.gmra.mrb[10].mxu0 %v2496_v25 }
  0x66   : > { %1953 = vmatprep.mubr.f32.mxu1 %v2478_v10  ;;  %2034 = vmatprep.mubr.f32.mxu0 %v2498_v31 }
  0x69   : > { %1954 = vmatmul.mubr.f32.gmra.mrb[10].mxu1 %v2496_v25  ;;  %2035 = vmatmul.mubr.f32.gmra.mrb[12].mxu0 %v2500_v32 }
  0x6a   : > { %1956 = vmatprep.mubr.f32.mxu1 %v2498_v31  ;;  %2037 = vmatprep.mubr.f32.mxu0 %v2502_v33 }
  0x6d   : > { %1957 = vmatmul.mubr.f32.gmra.mrb[12].mxu1 %v2500_v32  ;;  %2038 = vmatmul.mubr.f32.gmra.mrb[14].mxu0 %v2520_v50 }
  0x6e   : > { %1959 = vmatprep.mubr.f32.mxu1 %v2502_v33  ;;  %2042 = vmatprep.mubr.f32.mxu0 %v2400_v13 }
  0x71   : > { %1960 = vmatmul.mubr.f32.gmra.mrb[14].mxu1 %v2520_v50  ;;  %2043 = vmatmul.mubr.f32.vlgmr.msra.gmra.mrb[0].mxu0 %v2402_v14 }
  0x72   : > { %1964 = vmatprep.mubr.f32.mxu1 %v2414_v23  ;;  %2045 = vmatprep.mubr.f32.mxu0 %v2405_v16 }
  0x75   : > { %1965 = vmatmul.mubr.f32.vlgmr.msra.gmra.mrb[0].mxu1 %v2417_v24  ;;  %2046 = vmatmul.mubr.f32.gmra.mrb[2].mxu0 %v2422_v27 }
  0x76   : > { %1967 = vmatprep.mubr.f32.mxu1 %v2420_v26  ;;  %2048 = vmatprep.mubr.f32.mxu0 %v2424_v28 }
  0x79   : > { %1968 = vmatmul.mubr.f32.gmra.mrb[2].mxu1 %v2435_v35  ;;  %2049 = vmatmul.mubr.f32.gmra.mrb[4].mxu0 %v2426_v29 }
  0x7a   : > { %1970 = vmatprep.mubr.f32.mxu1 %v2438_v36  ;;  %2051 = vmatprep.mubr.f32.mxu0 %v2428_v30 }
  0x7d   : > { %1971 = vmatmul.mubr.f32.gmra.mrb[4].mxu1 %v2441_v37  ;;  %2052 = vmatmul.mubr.f32.gmra.mrb[6].mxu0 %v2449_v42 }
  0x7e   : > { %1973 = vmatprep.mubr.f32.mxu1 %v2444_v38  ;;  %2054 = vmatprep.mubr.f32.mxu0 %v2474_v8 }
  0x81   : > { %1974 = vmatmul.mubr.f32.gmra.mrb[6].mxu1 %v2459_v53  ;;  %2055 = vmatmul.mubr.f32.gmra.mrb[8].mxu0 %v2476_v9 }
  0x82   : > { %1976 = vmatprep.mubr.f32.mxu1 %v2487_v19  ;;  %2057 = vmatprep.mubr.f32.mxu0 %v2478_v10 }
  0x85   : > { %1977 = vmatmul.mubr.f32.gmra.mrb[8].mxu1 %v2491_v21  ;;  %2058 = vmatmul.mubr.f32.gmra.mrb[10].mxu0 %v2496_v25 }
  0x86   : > { %1979 = vmatprep.mubr.f32.mxu1 %v2494_v22  ;;  %2060 = vmatprep.mubr.f32.mxu0 %v2498_v31 }
  0x89   : > { %1980 = vmatmul.mubr.f32.gmra.mrb[10].mxu1 %v2509_v43  ;;  %2061 = vmatmul.mubr.f32.gmra.mrb[12].mxu0 %v2500_v32 }
  0x8a   : > { %1982 = vmatprep.mubr.f32.mxu1 %v2512_v44  ;;  %2063 = vmatprep.mubr.f32.mxu0 %v2502_v33 }
  0x8d   : > { %1983 = vmatmul.mubr.f32.gmra.mrb[12].mxu1 %v2518_v49  ;;  %2064 = vmatmul.mubr.f32.gmra.mrb[14].mxu0 %v2520_v50 }
  0x8e   : > { %1985 = vmatprep.mubr.f32.mxu1 %v2525_v55 }
  0x91   : > { %1986 = vmatmul.mubr.f32.gmra.mrb[14].mxu1 %v2530_v59 }
 0x144   : > { %v2044_v1 = vpop.f32.mrb[0].mxu0 }
 0x145   : > { %v1280_v2 = vpop.f32.mrb[1].mxu0 }
 0x148   : > { %v1966_v13 = vpop.f32.mrb[0].mxu1  ;;  %v2047_v14 = vpop.f32.mrb[2].mxu0 }
 0x149   : > { %v2610_v16 = vadd.f32 %v2044_v1, %v1966_v13  ;;  %v745_v23 = vpop.f32.mrb[1].mxu1  ;;  %v1292_v24 = vpop.f32.mrb[3].mxu0 }
 0x14a   : > { %v2612_v26 = vadd.f32 %v1280_v2, %v745_v23 }
 0x14c   : > { %v1969_v27 = vpop.f32.mrb[2].mxu1  ;;  %v2050_v28 = vpop.f32.mrb[4].mxu0 }
 0x14d   : > { %v2614_v29 = vadd.f32 %v2047_v14, %v1969_v27  ;;  %v759_v30 = vpop.f32.mrb[3].mxu1  ;;  %v1304_v35 = vpop.f32.mrb[5].mxu0 }
 0x14e   : > { %v2616_v36 = vadd.f32 %v1292_v24, %v759_v30 }
 0x150   : > { %v1972_v37 = vpop.f32.mrb[4].mxu1  ;;  %v2053_v38 = vpop.f32.mrb[6].mxu0 }
 0x151   : > { %v2618_v42 = vadd.f32 %v2050_v28, %v1972_v37  ;;  %v773_v53 = vpop.f32.mrb[5].mxu1  ;;  %v1316_v8 = vpop.f32.mrb[7].mxu0 }
 0x152   : > { %v2620_v9 = vadd.f32 %v1304_v35, %v773_v53 }
 0x154   : > { %v1975_v10 = vpop.f32.mrb[6].mxu1  ;;  %v2056_v15 = vpop.f32.mrb[8].mxu0 }
 0x155   : > { %v2622_v17 = vadd.f32 %v2053_v38, %v1975_v10  ;;  %v787_v18 = vpop.f32.mrb[7].mxu1  ;;  %v1328_v19 = vpop.f32.mrb[9].mxu0 }
 0x156   : > { %v2624_v20 = vadd.f32 %v1316_v8, %v787_v18 }
 0x158   : > { %v1978_v21 = vpop.f32.mrb[8].mxu1  ;;  %v2059_v22 = vpop.f32.mrb[10].mxu0 }
 0x159   : > { %v2626_v25 = vadd.f32 %v2056_v15, %v1978_v21  ;;  %v801_v31 = vpop.f32.mrb[9].mxu1  ;;  %v1340_v32 = vpop.f32.mrb[11].mxu0 }
 0x15a   : > { %v2628_v33 = vadd.f32 %v1328_v19, %v801_v31 }
 0x15c   : > { %v1981_v34 = vpop.f32.mrb[10].mxu1  ;;  %v2062_v39 = vpop.f32.mrb[12].mxu0 }
 0x15d   : > { %v2630_v40 = vadd.f32 %v2059_v22, %v1981_v34  ;;  %v815_v41 = vpop.f32.mrb[11].mxu1  ;;  %v1352_v43 = vpop.f32.mrb[13].mxu0 }
 0x15e   : > { %v2632_v44 = vadd.f32 %v1340_v32, %v815_v41 }
 0x160   : > { %v1984_v45 = vpop.f32.mrb[12].mxu1  ;;  %v2065_v46 = vpop.f32.mrb[14].mxu0  ;;  %1379 = sbr.rel (%p2606_p2) target bundleno = 359 (0x167), region = 32 }
 0x161   : > { %v2634_v47 = vadd.f32 %v2062_v39, %v1984_v45  ;;  %v829_v48 = vpop.f32.mrb[13].mxu1  ;;  %v1364_v49 = vpop.f32.mrb[15].mxu0 }
 0x162   : > { %v2636_v50 = vadd.f32 %v1352_v43, %v829_v48 }
 0x164   : > { %v1987_v51 = vpop.f32.mrb[14].mxu1 }
 0x165   : > { %v2638_v52 = vadd.f32 %v2065_v46, %v1987_v51  ;;  %v843_v54 = vpop.f32.mrb[15].mxu1 }
 0x166   : > { %v2640_v55 = vadd.f32 %v1364_v49, %v843_v54 }
 0x167 PF: > { %1386 = vmin.xlane.f32.xlu1 %v2616_v36  ;;  %1382 = vmin.xlane.f32.xlu0 %v2612_v26  ;;  %p1802_p3 = scmp.ne.s32.totalorder %s2254_s17, 0 }
 0x168   : > { %vm1417_vm2 = vcmask (!%p1802_p3), 7168   ;;  %v2282_v2 = vmov (!%p1802_p3), 1e+30  }
 0x169   : > { %1418 = vst.msk [vmem:[#allocation3] sm:$0xff] (!%p1802_p3), %vm1417_vm2, %v2282_v2  ;;  %1419 = vst.msk [vmem:[#allocation3 + $0x8] sm:$0xff] (!%p1802_p3), %vm1417_vm2, %v2282_v2 }
 0x16a   : > { %1420 = vst.msk [vmem:[#allocation3 + $0x10] sm:$0xff] (!%p1802_p3), %vm1417_vm2, %v2282_v2  ;;  %1421 = vst.msk [vmem:[#allocation3 + $0x18] sm:$0xff] (!%p1802_p3), %vm1417_vm2, %v2282_v2 }
 0x16b   : > { %1388 = vmin.xlane.f32.xlu1 %v2614_v29  ;;  %1384 = vmin.xlane.f32.xlu0 %v2610_v16  ;;  %1422 = vst.msk [vmem:[#allocation3 + $0x20] sm:$0xff] (!%p1802_p3), %vm1417_vm2, %v2282_v2  ;;  %1423 = vst.msk [vmem:[#allocation3 + $0x28] sm:$0xff] (!%p1802_p3), %vm1417_vm2, %v2282_v2 }
 0x16c   : > { %1424 = vst.msk [vmem:[#allocation3 + $0x30] sm:$0xff] (!%p1802_p3), %vm1417_vm2, %v2282_v2  ;;  %1425 = vst.msk [vmem:[#allocation3 + $0x38] sm:$0xff] (!%p1802_p3), %vm1417_vm2, %v2282_v2 }
 0x16d   : > { %1426 = vst.msk [vmem:[#allocation3 + $0x40] sm:$0xff] (!%p1802_p3), %vm1417_vm2, %v2282_v2  ;;  %1427 = vst.msk [vmem:[#allocation3 + $0x48] sm:$0xff] (!%p1802_p3), %vm1417_vm2, %v2282_v2 }
 0x16e   : > { %1428 = vst.msk [vmem:[#allocation3 + $0x50] sm:$0xff] (!%p1802_p3), %vm1417_vm2, %v2282_v2  ;;  %1429 = vst.msk [vmem:[#allocation3 + $0x58] sm:$0xff] (!%p1802_p3), %vm1417_vm2, %v2282_v2 }
 0x16f   : > { %1392 = vmin.xlane.f32.xlu1 %v2618_v42  ;;  %1390 = vmin.xlane.f32.xlu0 %v2620_v9  ;;  %1430 = vst.msk [vmem:[#allocation3 + $0x60] sm:$0xff] (!%p1802_p3), %vm1417_vm2, %v2282_v2  ;;  %1431 = vst.msk [vmem:[#allocation3 + $0x68] sm:$0xff] (!%p1802_p3), %vm1417_vm2, %v2282_v2 }
 0x170   : > { %1432 = vst.msk [vmem:[#allocation3 + $0x70] sm:$0xff] (!%p1802_p3), %vm1417_vm2, %v2282_v2  ;;  %1433 = vst.msk [vmem:[#allocation3 + $0x78] sm:$0xff] (!%p1802_p3), %vm1417_vm2, %v2282_v2 }
 0x173   : > { %1396 = vmin.xlane.f32.xlu1 %v2622_v17  ;;  %1394 = vmin.xlane.f32.xlu0 %v2624_v20 }
 0x177   : > { %1400 = vmin.xlane.f32.xlu1 %v2626_v25  ;;  %1398 = vmin.xlane.f32.xlu0 %v2628_v33 }
 0x17b   : > { %1404 = vmin.xlane.f32.xlu1 %v2630_v40  ;;  %1402 = vmin.xlane.f32.xlu0 %v2632_v44 }
 0x17f   : > { %1408 = vmin.xlane.f32.xlu1 %v2634_v47  ;;  %1406 = vmin.xlane.f32.xlu0 %v2636_v50 }
 0x183   : > { %1412 = vmin.xlane.f32.xlu1 %v2638_v52  ;;  %1410 = vmin.xlane.f32.xlu0 %v2640_v55 }
 0x1f4   : > { %v1387_v57 = vpop.xlane.xlu1 %1386  ;;  %v1383_v58 = vpop.xlane.xlu0 %1382 }
 0x1f8   : > { %v1389_v59 = vpop.xlane.xlu1 %1388  ;;  %v1385_v60 = vpop.xlane.xlu0 %1384 }
 0x1fc   : > { %v1393_v61 = vpop.xlane.xlu1 %1392  ;;  %v1391_v62 = vpop.xlane.xlu0 %1390 }
 0x200   : > { %v2660_v63 = vpop.xlane.xlu1 %1396  ;;  %v2662_v0 = vpop.xlane.xlu0 %1394 }
 0x204   : > { %v2664_v3 = vpop.xlane.xlu1 %1400  ;;  %v2666_v4 = vpop.xlane.xlu0 %1398 }
 0x208   : > { %v2668_v5 = vpop.xlane.xlu1 %1404  ;;  %v2670_v6 = vpop.xlane.xlu0 %1402 }
 0x20a   : > { %1416 = sbr.rel (%p1802_p3) target bundleno = 529 (0x211), region = 36 }
 0x20c   : > { %v2672_v7 = vpop.xlane.xlu1 %1408  ;;  %v2674_v11 = vpop.xlane.xlu0 %1406 }
 0x210   : > { %v2676_v12 = vpop.xlane.xlu1 %1412  ;;  %v2678_v1 = vpop.xlane.xlu0 %1410 }
 0x211 PF: > { %v1434_v13 = vld [vmem:[#allocation3] sm:$0xff]  ;;  %vm1466_vm3 = vcmask 7168   ;;  %v1435_v14 = vld [vmem:[#allocation3 + $0x8] sm:$0xff]  ;;  %v1436_v23 = vld [vmem:[#allocation3 + $0x10] sm:$0xff]  ;;  %p1483_p4 = scmp.eq.s32.totalorder %s2254_s17, 1  ;;  %p1803_p5 = scmp.ne.s32.totalorder %s2254_s17, 1 }
 0x212   : > { %v1450_v24 = vmin.f32 %v1434_v13, %v1383_v58  ;;  %v1451_v27 = vmin.f32 %v1435_v14, %v1385_v60  ;;  %v1452_v28 = vmin.f32 %v1436_v23, %v1387_v57  ;;  %v1437_v30 = vld [vmem:[#allocation3 + $0x18] sm:$0xff]  ;;  %v1438_v35 = vld [vmem:[#allocation3 + $0x20] sm:$0xff]  ;;  %v1439_v37 = vld [vmem:[#allocation3 + $0x28] sm:$0xff]  ;;  %v1520_v58 = vlaneseq (!%p1803_p5)  ;;  %s1804_s27 = sshll.u32 (!%p1803_p5), %s2258_s18, 7 }
 0x213   : > { %v1453_v38 = vmin.f32 %v1437_v30, %v1389_v59  ;;  %v1454_v53 = vmin.f32 %v1438_v35, %v1391_v62  ;;  %v1455_v8 = vmin.f32 %v1439_v37, %v1393_v61  ;;  %v1440_v10 = vld [vmem:[#allocation3 + $0x30] sm:$0xff]  ;;  %v1441_v15 = vld [vmem:[#allocation3 + $0x38] sm:$0xff]  ;;  %v1442_v18 = vld [vmem:[#allocation3 + $0x40] sm:$0xff]  ;;  %v2730_v62 = vstv (!%p1803_p5), %s1804_s27 }
 0x214   : > { %1467 = vst.msk [vmem:[#allocation3] sm:$0xff] %vm1466_vm3, %v1450_v24  ;;  %1468 = vst.msk [vmem:[#allocation3 + $0x8] sm:$0xff] %vm1466_vm3, %v1451_v27  ;;  %v1456_v19 = vmin.f32 %v1440_v10, %v2662_v0  ;;  %v1457_v21 = vmin.f32 %v1441_v15, %v2660_v63  ;;  %v1458_v22 = vmin.f32 %v1442_v18, %v2666_v4  ;;  %v1443_v31 = vld [vmem:[#allocation3 + $0x48] sm:$0xff]  ;;  %v1444_v32 = vld [vmem:[#allocation3 + $0x50] sm:$0xff]  ;;  %v2725_v59 = vshrl.u32 (!%p1803_p5), %v1520_v58, 7 }
 0x215   : > { %1469 = vst.msk [vmem:[#allocation3 + $0x10] sm:$0xff] %vm1466_vm3, %v1452_v28  ;;  %v1445_v34 = vld [vmem:[#allocation3 + $0x58] sm:$0xff]  ;;  %1470 = vst.msk [vmem:[#allocation3 + $0x18] sm:$0xff] %vm1466_vm3, %v1453_v38  ;;  %v1459_v39 = vmin.f32 %v1443_v31, %v2664_v3  ;;  %v1460_v41 = vmin.f32 %v1444_v32, %v2670_v6  ;;  %v1446_v45 = vld [vmem:[#allocation3 + $0x60] sm:$0xff]  ;;  %1486 = sbr.rel (%p1803_p5) target bundleno = 590 (0x24e), region = 40 }
 0x216   : > { %1471 = vst.msk [vmem:[#allocation3 + $0x20] sm:$0xff] %vm1466_vm3, %v1454_v53  ;;  %1472 = vst.msk [vmem:[#allocation3 + $0x28] sm:$0xff] %vm1466_vm3, %v1455_v8  ;;  %v1461_v43 = vmin.f32 %v1445_v34, %v2668_v5  ;;  %v1447_v46 = vld [vmem:[#allocation3 + $0x68] sm:$0xff]  ;;  %v1448_v48 = vld [vmem:[#allocation3 + $0x70] sm:$0xff]  ;;  %v1462_v49 = vmin.f32 %v1446_v45, %v2674_v11  ;;  %v1522_v60 = vadd.s32 (!%p1803_p5), 8, %v2725_v59  ;;  %v1523_v61 = vadd.s32 (!%p1803_p5), 16, %v2725_v59 }
 0x217   : > { %1473 = vst.msk [vmem:[#allocation3 + $0x30] sm:$0xff] %vm1466_vm3, %v1456_v19  ;;  %1474 = vst.msk [vmem:[#allocation3 + $0x38] sm:$0xff] %vm1466_vm3, %v1457_v21  ;;  %v1463_v51 = vmin.f32 %v1447_v46, %v2672_v7  ;;  %v1464_v54 = vmin.f32 %v1448_v48, %v2678_v1  ;;  %v1449_v56 = vld [vmem:[#allocation3 + $0x78] sm:$0xff]  ;;  %v1524_v63 = vadd.s32 (!%p1803_p5), 24, %v2725_v59  ;;  %v1538_v3 = vadd.s32 (!%p1803_p5), %v2730_v62, %v2725_v59 }
 0x218   : > { %1475 = vst.msk [vmem:[#allocation3 + $0x40] sm:$0xff] %vm1466_vm3, %v1458_v22  ;;  %1476 = vst.msk [vmem:[#allocation3 + $0x48] sm:$0xff] %vm1466_vm3, %v1459_v39  ;;  %v1465_v57 = vmin.f32 %v1449_v56, %v2676_v12  ;;  %v1525_v6 = vadd.s32 (!%p1803_p5), 32, %v2725_v59  ;;  %v1539_v7 = vadd.s32 (!%p1803_p5), %v2730_v62, %v1522_v60  ;;  %v1540_v11 = vadd.s32 (!%p1803_p5), %v2730_v62, %v1523_v61 }
 0x219   : > { %1477 = vst.msk [vmem:[#allocation3 + $0x50] sm:$0xff] %vm1466_vm3, %v1460_v41  ;;  %1478 = vst.msk [vmem:[#allocation3 + $0x58] sm:$0xff] %vm1466_vm3, %v1461_v43  ;;  %v2739_v12 = vstv (!%p1803_p5), %s2376_s15  ;;  %v1526_v13 = vadd.s32 (!%p1803_p5), 40, %v2725_v59  ;;  %v1541_v14 = vadd.s32 (!%p1803_p5), %v2730_v62, %v1524_v63  ;;  %v1527_v28 = vadd.s32 (!%p1803_p5), 48, %v2725_v59 }
 0x21a   : > { %1479 = vst.msk [vmem:[#allocation3 + $0x60] sm:$0xff] %vm1466_vm3, %v1462_v49  ;;  %1480 = vst.msk [vmem:[#allocation3 + $0x68] sm:$0xff] %vm1466_vm3, %v1463_v51  ;;  %vm1555_vm4 = vcmp.lt.s32.totalorder (!%p1803_p5), %v1538_v3, %v2739_v12  ;;  %v1542_v30 = vadd.s32 (!%p1803_p5), %v2730_v62, %v1525_v6  ;;  %vm1556_vm5 = vcmp.lt.s32.totalorder (!%p1803_p5), %v1539_v7, %v2739_v12  ;;  %v1528_v38 = vadd.s32 (!%p1803_p5), 56, %v2725_v59 }
 0x21b   : > { %1481 = vst.msk [vmem:[#allocation3 + $0x70] sm:$0xff] %vm1466_vm3, %v1464_v54  ;;  %1482 = vst.msk [vmem:[#allocation3 + $0x78] sm:$0xff] %vm1466_vm3, %v1465_v57  ;;  %v1487_v0 = vld [vmem:[#allocation3] sm:$0xff] (!%p1803_p5)  ;;  %v1488_v4 = vld [vmem:[#allocation3 + $0x8] sm:$0xff] (!%p1803_p5)  ;;  %vm1557_vm6 = vcmp.lt.s32.totalorder (!%p1803_p5), %v1540_v11, %v2739_v12  ;;  %v1543_v53 = vadd.s32 (!%p1803_p5), %v2730_v62, %v1526_v13  ;;  %vm1558_vm7 = vcmp.lt.s32.totalorder (!%p1803_p5), %v1541_v14, %v2739_v12  ;;  %v1529_v21 = vadd.s32 (!%p1803_p5), 64, %v2725_v59 }
 0x21c   : > { %v1489_v5 = vld [vmem:[#allocation3 + $0x10] sm:$0xff]  ;;  %v1490_v1 = vld [vmem:[#allocation3 + $0x18] sm:$0xff]  ;;  %v1503_v2 = vmax.f32 %v1487_v0, 0.0  ;;  %v1504_v23 = vmax.f32 %v1488_v4, 0.0  ;;  %v1544_v22 = vadd.s32 %v2730_v62, %v1527_v28  ;;  %vm1559_vm8 = vcmp.lt.s32.totalorder %v1542_v30, %v2739_v12 }
 0x21d   : > { %v1505_v24 = vmax.f32 %v1489_v5, 0.0  ;;  %v1491_v27 = vld [vmem:[#allocation3 + $0x20] sm:$0xff]  ;;  %v1506_v35 = vmax.f32 %v1490_v1, 0.0  ;;  %v1492_v37 = vld [vmem:[#allocation3 + $0x28] sm:$0xff]  ;;  %v1530_v32 = vadd.s32 72, %v2725_v59  ;;  %v1545_v43 = vadd.s32 %v2730_v62, %v1528_v38 }
 0x21e   : > { %v1571_v8 = vsel %vm1555_vm4, %v1503_v2, 0.0  ;;  %v1507_v10 = vmax.f32 %v1491_v27, 0.0  ;;  %v1572_v15 = vsel %vm1556_vm5, %v1504_v23, 0.0  ;;  %v1493_v19 = vld [vmem:[#allocation3 + $0x30] sm:$0xff]  ;;  %v1508_v31 = vmax.f32 %v1492_v37, 0.0  ;;  %v1494_v41 = vld [vmem:[#allocation3 + $0x38] sm:$0xff] }
 0x21f   : > { %v1573_v18 = vsel %vm1557_vm6, %v1505_v24, 0.0  ;;  %v1574_v34 = vsel %vm1558_vm7, %v1506_v35, 0.0  ;;  %v1587_v39 = vsel %vm1466_vm3, %v1571_v8, 0.0  ;;  %vm1560_vm9 = vcmp.lt.s32.totalorder %v1543_v53, %v2739_v12  ;;  %v1495_v54 = vld [vmem:[#allocation3 + $0x40] sm:$0xff]  ;;  %v1496_v0 = vld [vmem:[#allocation3 + $0x48] sm:$0xff] }
 0x220   : > { %v1588_v45 = vsel %vm1466_vm3, %v1572_v15, 0.0  ;;  %v1590_v46 = vsel %vm1466_vm3, %v1573_v18, 0.0  ;;  %v1509_v48 = vmax.f32 %v1493_v19, 0.0  ;;  %v1575_v49 = vsel %vm1559_vm8, %v1507_v10, 0.0  ;;  %v1497_v1 = vld [vmem:[#allocation3 + $0x50] sm:$0xff]  ;;  %v1498_v28 = vld [vmem:[#allocation3 + $0x58] sm:$0xff] }
 0x221   : > { %v1589_v51 = vadd.f32 %v1588_v45, %v1587_v39  ;;  %v1531_v56 = vadd.s32 80, %v2725_v59  ;;  %v1546_v57 = vadd.s32 %v2730_v62, %v1529_v21  ;;  %vm1561_vm10 = vcmp.lt.s32.totalorder %v1544_v22, %v2739_v12  ;;  %v1499_v10 = vld [vmem:[#allocation3 + $0x60] sm:$0xff] }
 0x222   : > { %v1592_v58 = vsel %vm1466_vm3, %v1574_v34, 0.0  ;;  %v1510_v60 = vmax.f32 %v1494_v41, 0.0  ;;  %v1576_v61 = vsel %vm1560_vm9, %v1508_v31, 0.0  ;;  %v1532_v3 = vadd.s32 88, %v2725_v59 }
 0x223   : > { %v1591_v63 = vadd.f32 %v1590_v46, %v1589_v51  ;;  %v1547_v4 = vadd.s32 %v2730_v62, %v1530_v32  ;;  %vm1562_vm11 = vcmp.lt.s32.totalorder %v1545_v43, %v2739_v12  ;;  %v1594_v5 = vsel %vm1466_vm3, %v1575_v49, 0.0  ;;  %v1500_v32 = vld [vmem:[#allocation3 + $0x68] sm:$0xff] }
 0x224   : > { %v1511_v6 = vmax.f32 %v1495_v54, 0.0  ;;  %v1577_v7 = vsel %vm1561_vm10, %v1509_v48, 0.0  ;;  %v1533_v2 = vadd.s32 96, %v2725_v59  ;;  %v1548_v13 = vadd.s32 %v2730_v62, %v1531_v56  ;;  %v1501_v48 = vld [vmem:[#allocation3 + $0x70] sm:$0xff] }
 0x225   : > { %v1593_v11 = vadd.f32 %v1592_v58, %v1591_v63  ;;  %vm1563_vm12 = vcmp.lt.s32.totalorder %v1546_v57, %v2739_v12  ;;  %v1596_v14 = vsel %vm1466_vm3, %v1576_v61, 0.0  ;;  %v1512_v23 = vmax.f32 %v1496_v0, 0.0 }
 0x226   : > { %v1578_v24 = vsel %vm1562_vm11, %v1510_v60, 0.0  ;;  %v1534_v30 = vadd.s32 104, %v2725_v59  ;;  %v1549_v35 = vadd.s32 %v2730_v62, %v1532_v3  ;;  %vm1564_vm13 = vcmp.lt.s32.totalorder %v1547_v4, %v2739_v12 }
 0x227   : > { %v1595_v27 = vadd.f32 %v1594_v5, %v1593_v11  ;;  %v1598_v37 = vsel %vm1466_vm3, %v1577_v7, 0.0  ;;  %v1513_v38 = vmax.f32 %v1497_v1, 0.0  ;;  %v1579_v53 = vsel %vm1563_vm12, %v1511_v6, 0.0 }
 0x228   : > { %v1535_v15 = vadd.s32 112, %v2725_v59  ;;  %v1550_v18 = vadd.s32 %v2730_v62, %v1533_v2  ;;  %vm1565_vm14 = vcmp.lt.s32.totalorder %v1548_v13, %v2739_v12  ;;  %v1600_v19 = vsel %vm1466_vm3, %v1578_v24, 0.0 }
 0x229   : > { %v1597_v8 = vadd.f32 %v1596_v14, %v1595_v27  ;;  %v1514_v21 = vmax.f32 %v1498_v28, 0.0  ;;  %v1580_v22 = vsel %vm1564_vm13, %v1512_v23, 0.0  ;;  %v1536_v34 = vadd.s32 120, %v2725_v59  ;;  %v1502_v59 = vld [vmem:[#allocation3 + $0x78] sm:$0xff] }
 0x22a   : > { %v1551_v39 = vadd.s32 %v2730_v62, %v1534_v30  ;;  %vm1566_vm15 = vcmp.lt.s32.totalorder %v1549_v35, %v2739_v12  ;;  %v1602_v41 = vsel %vm1466_vm3, %v1579_v53, 0.0  ;;  %v1515_v43 = vmax.f32 %v1499_v10, 0.0  ;;  %v1624_v53 = vld [vmem:[#allocation4] sm:$0x1] }
 0x22b   : > { %v1599_v31 = vadd.f32 %v1598_v37, %v1597_v8  ;;  %v1581_v45 = vsel %vm1565_vm14, %v1513_v38, 0.0  ;;  %v1552_v49 = vadd.s32 %v2730_v62, %v1535_v15  ;;  %vm1567_vm0 = vcmp.lt.s32.totalorder %v1550_v18, %v2739_v12 }
 0x22c   : > { %v1604_v51 = vsel %vm1466_vm3, %v1580_v22, 0.0  ;;  %v1516_v54 = vmax.f32 %v1500_v32, 0.0  ;;  %v1582_v56 = vsel %vm1566_vm15, %v1514_v21, 0.0  ;;  %v1553_v58 = vadd.s32 %v2730_v62, %v1536_v34 }
 0x22d   : > { %v1601_v46 = vadd.f32 %v1600_v19, %v1599_v31  ;;  %vm1568_vm1 = vcmp.lt.s32.totalorder %v1551_v39, %v2739_v12  ;;  %v1606_v60 = vsel %vm1466_vm3, %v1581_v45, 0.0  ;;  %v1517_v61 = vmax.f32 %v1501_v48, 0.0 }
 0x22e   : > { %v1583_v63 = vsel %vm1567_vm0, %v1515_v43, 0.0  ;;  %vm1569_vm2 = vcmp.lt.s32.totalorder %v1552_v49, %v2739_v12  ;;  %v1608_v3 = vsel %vm1466_vm3, %v1582_v56, 0.0  ;;  %v1518_v4 = vmax.f32 %v1502_v59, 0.0 }
 0x22f   : > { %v1603_v57 = vadd.f32 %v1602_v41, %v1601_v46  ;;  %v1584_v5 = vsel %vm1568_vm1, %v1516_v54, 0.0  ;;  %vm1570_vm4 = vcmp.lt.s32.totalorder %v1553_v58, %v2739_v12  ;;  %v1610_v7 = vsel %vm1466_vm3, %v1583_v63, 0.0 }
 0x230   : > { %v1585_v11 = vsel %vm1569_vm2, %v1517_v61, 0.0  ;;  %v1612_v1 = vsel %vm1466_vm3, %v1584_v5, 0.0  ;;  %v1586_v2 = vsel %vm1570_vm4, %v1518_v4, 0.0  ;;  %vm1626_vm5 = vcmask 0  }
 0x231   : > { %v1605_v0 = vadd.f32 %v1604_v51, %v1603_v57  ;;  %v1614_v14 = vsel %vm1466_vm3, %v1585_v11, 0.0  ;;  %v1616_v24 = vsel %vm1466_vm3, %v1586_v2, 0.0 }
 0x233   : > { %v1607_v6 = vadd.f32 %v1606_v60, %v1605_v0 }
 0x235   : > { %v1609_v62 = vadd.f32 %v1608_v3, %v1607_v6 }
 0x237   : > { %v1611_v13 = vadd.f32 %v1610_v7, %v1609_v62 }
 0x239   : > { %v1613_v23 = vadd.f32 %v1612_v1, %v1611_v13 }
 0x23b   : > { %v1615_v27 = vadd.f32 %v1614_v14, %v1613_v23 }
 0x23d   : > { %v1617_v28 = vadd.f32 %v1616_v24, %v1615_v27 }
 0x23f   : > { %v1618_v30 = vrot.slane %v1617_v28, 4 }
 0x241   : > { %v1619_v35 = vadd.f32 %v1618_v30, %v1617_v28 }
 0x243   : > { %v1620_v37 = vrot.slane %v1619_v35, 2 }
 0x245   : > { %v1621_v38 = vadd.f32 %v1620_v37, %v1619_v35 }
 0x247   : > { %v1622_v12 = vrot.slane %v1621_v38, 1 }
 0x249   : > { %v1623_v8 = vadd.f32 %v1622_v12, %v1621_v38 }
 0x24b   : > { %v1625_v10 = vadd.f32 %v1624_v53, %v1623_v8 }
 0x24d   : > { %1627 = vst.msk [vmem:[#allocation4] sm:$0x1] %vm1626_vm5, %v1625_v10 }
 0x24e PF: > { %v1628_v15 = vmin.f32 %v2612_v26, %v2620_v9  ;;  %v1629_v18 = vmin.f32 %v2610_v16, %v2618_v42  ;;  %v1630_v19 = vmin.f32 %v2616_v36, %v2624_v20  ;;  %v1631_v21 = vmin.f32 %v2614_v29, %v2622_v17  ;;  %p1805_p6 = scmp.ne.s32.totalorder %s2258_s18, 0 }
 0x24f   : > { %s1652_s4 = scalar_lea.vmem (!%p1805_p6), [#allocation2], %s2254_s17 }
 0x250   : > { %v1632_v22 = vmin.f32 %v1628_v15, %v2628_v33  ;;  %v1633_v31 = vmin.f32 %v1629_v18, %v2626_v25  ;;  %v1634_v32 = vmin.f32 %v1630_v19, %v2632_v44  ;;  %v1635_v34 = vmin.f32 %v1631_v21, %v2630_v40 }
 0x251   : > { %v2283_v40 = vmov (!%p1805_p6), 1e+30  }
 0x252   : > { %v1636_v39 = vmin.f32 %v1632_v22, %v2636_v50  ;;  %v1637_v26 = vmin.f32 %v1633_v31, %v2634_v47  ;;  %v1638_v16 = vmin.f32 %v1634_v32, %v2640_v55  ;;  %v1639_v42 = vmin.f32 %v1635_v34, %v2638_v52  ;;  %1653 = vst [vmem:[%s1652_s4] sm:$0x1] (!%p1805_p6), %v2283_v40 }
 0x254   : > { %v1640_v36 = vmin.f32 %v1636_v39, %v1637_v26  ;;  %v1641_v9 = vmin.f32 %v1638_v16, %v1639_v42 }
 0x256   : > { %v1642_v20 = vmin.f32 %v1640_v36, %v1641_v9 }
 0x258   : > { %v1643_v29 = vrot.slane %v1642_v20, 4 }
 0x25a   : > { %v1644_v17 = vmin.f32 %v1642_v20, %v1643_v29 }
 0x25c   : > { %v1645_v33 = vrot.slane %v1644_v17, 2  ;;  %1651 = sbr.rel (%p1805_p6) target bundleno = 611 (0x263), region = 44 }
 0x25e   : > { %v1646_v41 = vmin.f32 %v1644_v17, %v1645_v33 }
 0x260   : > { %v1647_v25 = vrot.slane %v1646_v41, 1 }
 0x262   : > { %v1648_v43 = vmin.f32 %v1646_v41, %v1647_v25 }
 0x263 PF: > { %p1658_p7 = scmp.eq.s32.totalorder %s2258_s18, 1  ;;  %s1654_s5 = scalar_lea.vmem [#allocation2], %s2254_s17 }
 0x264   : > { %v1655_v44 = vld [vmem:[%s1654_s5] sm:$0x1] }
 0x265   : > { %v1656_v47 = vmin.f32 %v1655_v44, %v1648_v43  ;;  %p1659_p8 = pnand %p1658_p7, %p1483_p4 }
 0x266   : > { %v1665_v52 = vlaneseq (!%p1659_p8)  ;;  %v1667_v46 = vstv (!%p1659_p8), %s2372_s12  ;;  %vm1670_vm3 = vcmask (!%p1659_p8), 1040384   ;;  %p1688_p9 = scmp.gt.s32.totalorder (!%p1659_p8), %s2376_s15, 1  ;;  %p1685_p10 = scmp.gt.s32.totalorder (!%p1659_p8), %s2372_s12, 1  ;;  %v1691_v0 = vld [vmem:[#allocation4] sm:$0x1] (!%p1659_p8)  ;;  %vm1699_vm8 = vcmask (!%p1659_p8), 0  }
 0x267   : > { %1657 = vst [vmem:[%s1654_s5] sm:$0x1] %v1656_v47  ;;  %1662 = sbr.rel (%p1659_p8) target bundleno = 780 (0x30c), region = 48 }
 0x268   : > { %v1666_v48 = vand.u32 (!%p1659_p8), 127, %v1665_v52 }
 0x26a   : > { %vm1668_vm6 = vcmp.lt.s32.totalorder (!%p1659_p8), %v1666_v48, %v1667_v46  ;;  %v1678_v51 = vadd.s32 (!%p1659_p8), 128, %v1666_v48 }
 0x26c   : > { %vm1679_vm7 = vcmp.lt.s32.totalorder (!%p1659_p8), %v1678_v51, %v1667_v46 }
 0x26e   : > { %v1663_v50 = vld [vmem:[#allocation2] sm:$0x1]  ;;  %v1676_v55 = vld [vmem:[#allocation2 + $0x1] sm:$0x1]  ;;  %s2876_s15 = smov (!%p1688_p9, %s2376_s15), 1  ;;  %s2878_s12 = smov (!%p1685_p10, %s2372_s12), 1 }
 0x26f   : > { %v1664_v45 = vmax.f32 %v1663_v50, 0.0  ;;  %v1677_v49 = vmax.f32 %v1676_v55, 0.0  ;;  %s1690_s17 = scvt.s32.f32 %s2876_s15  ;;  %s1687_s18 = scvt.s32.f32 %s2878_s12 }
 0x271   : > { %v1669_v54 = vsel %vm1668_vm6, %v1664_v45, 0.0  ;;  %v1680_v57 = vsel %vm1679_vm7, %v1677_v49, 0.0  ;;  %v1692_v58 = vstv %s1690_s17  ;;  %v1695_v60 = vstv %s1687_s18 }
 0x272   : > { %v1671_v56 = vsel %vm1670_vm3, %v1669_v54, 0.0  ;;  %v1681_v59 = vsel %vm1670_vm3, %v1680_v57, 0.0  ;;  %2206 = vrcp.f32 %v1692_v58 }
 0x273   : > { %1672 = vadd.xlane.f32.xlu0 %v1671_v56  ;;  %2208 = vrcp.f32 %v1695_v60 }
 0x277   : > { %1682 = vadd.xlane.f32.xlu0 %v1681_v59 }
 0x27c   : > { %v2207_v63 = vpop.eup %2206 }
 0x27d   : > { %v2209_v3 = vpop.eup %2208  ;;  %v1694_v5 = vmul.f32 %v2207_v63, %v1691_v0 }
 0x300   : > { %v1673_v61 = vpop.xlane.xlu0 %1672 }
 0x304   : > { %v1683_v4 = vpop.xlane.xlu0 %1682 }
 0x305   : > { %v1684_v6 = vadd.f32 %v1683_v4, %v1673_v61 }
 0x307   : > { %v1697_v7 = vmul.f32 %v2209_v3, %v1684_v6 }
 0x309   : > { %v1698_v11 = vadd.f32 %v1697_v7, %v1694_v5 }
 0x30b   : > { %1700 = vst.msk [vmem:[%s212_s8] sm:$0x1] %vm1699_vm8, %v1698_v11 }
 0x30c PF: > { %s19_s22 = sadd.s32 1, %s2278_s22   ;;  %s2855_s17 = smov %s2266_s0 }
 0x30d   : > { %p16_p11 = scmp.ge.s32.totalorder %s19_s22, 18   ;;  %s2856_s18 = smov %s2270_s20 }
 0x30e   : > { %s2857_s19 = smov %s2274_s21  ;;  %s2858_s0 = smov %s2862_s23 }
 0x30f   : > { %s2859_s20 = smov %s2866_s24  ;;  %s2860_s21 = smov %s2870_s25 }
 0x310   :  { %18 = sbr.rel (!%p16_p11) target bundleno = 19 (0x13), region = 84 }

</bundles_post_ra>
